<compile_context>
chip_gen: v6e
topology: v6e:2x2x1
jax: 0.10.0
libtpu: 0.0.40
codegen_flags: <defaults>
</compile_context>

<pallas_src>
import math

import jax
import jax.numpy as jnp
import numpy as np
from jax import lax
from jax.experimental import pallas as pl
from jax.experimental.pallas import tpu as pltpu


def _resnet_att_kernel(x_ref, wt_ref, b_ref, p_ref, o_ref):
    # x_ref:  (Cin, HW)    bf16  -- one batch, channels-major, HW on lanes
    # wt_ref: (Cpad, Cin)  bf16  -- transposed 1x1-conv weight, Cout padded to 128*k
    # b_ref:  (Cpad, 1)    f32   -- bias (padded with zeros)
    # p_ref:  (AA, HW)     bf16  -- adaptive-avg-pool matrix
    # o_ref:  (AA, Cpad)   f32   -- lane-dense output tile
    # Stand-in backbone: 1x1 conv == channel matmul, + bias, ReLU (channels-major).
    y = jnp.dot(wt_ref[...], x_ref[...],
                preferred_element_type=jnp.float32)              # (Cpad, HW) f32
    y = jnp.maximum(y + b_ref[...], 0.0).astype(jnp.bfloat16)    # (Cpad, HW) bf16
    # Fused adaptive_avg_pool2d + view + transpose:
    #   out[q, c] = sum_hw P[q, hw] * y[c, hw]    (A.B^T pattern, K = HW on MXU)
    o_ref[...] = lax.dot_general(
        p_ref[...], y, (((1,), (1,)), ((), ())),
        preferred_element_type=jnp.float32)                      # (AA, Cpad) f32


def _adaptive_pool_matrix(H, W, A):
    """Rows average each adaptive_avg_pool2d bin (PyTorch bin arithmetic)."""
    P = np.zeros((A * A, H * W), dtype=np.float32)
    for i in range(A):
        h0, h1 = (i * H) // A, math.ceil((i + 1) * H / A)
        for j in range(A):
            w0, w1 = (j * W) // A, math.ceil((j + 1) * W / A)
            cnt = (h1 - h0) * (w1 - w0)
            for h in range(h0, h1):
                for w in range(w0, w1):
                    P[i * A + j, h * W + w] = 1.0 / cnt
    return jnp.asarray(P)


def resnet_att_forward(x_nchw, conv_w, conv_b, adaptive_size):
    """x_nchw: (B, Cin, H, W) float32 -> att_feats (B, A*A, Cout) float32."""
    B, Cin, H, W = x_nchw.shape
    Cout = conv_w.shape[1]
    A = adaptive_size
    AA = A * A
    HW = H * W
    Cpad = max(128, ((Cout + 127) // 128) * 128)  # lane-dense output channels

    # Free reshape (contiguous) -- no HBM transpose round trip.  bf16 for MXU/DMA.
    x = x_nchw.reshape(B, Cin, HW).astype(jnp.bfloat16)
    # W^T padded to lane-dense Cpad (extra rows are zero -> pooled tail is zero).
    wt = jnp.zeros((Cpad, Cin), jnp.bfloat16).at[:Cout, :].set(
        conv_w.T.astype(jnp.bfloat16))
    bias = jnp.zeros((Cpad, 1), jnp.float32).at[:Cout, 0].set(conv_b)
    # NOTE: bin weights are 1/16 here (H%A==0, W%A==0) -> exact in bf16; keep P
    # in f32 instead if bit-exact pooling weights for non-divisible bins matter.
    P = _adaptive_pool_matrix(H, W, A).astype(jnp.bfloat16)

    out = pl.pallas_call(
        _resnet_att_kernel,
        out_shape=jax.ShapeDtypeStruct((B, AA, Cpad), jnp.float32),
        grid_spec=pltpu.PrefetchScalarGridSpec(
            num_scalar_prefetch=0,
            grid=(B,),
            in_specs=[
                pl.BlockSpec((pl.Squeezed(), Cin, HW), lambda b: (b, 0, 0)),
                pl.BlockSpec((Cpad, Cin), lambda b: (0, 0)),
                pl.BlockSpec((Cpad, 1), lambda b: (0, 0)),
                pl.BlockSpec((AA, HW), lambda b: (0, 0)),
            ],
            out_specs=pl.BlockSpec((pl.Squeezed(), AA, Cpad),
                                   lambda b: (b, 0, 0)),
        ),
        compiler_params=pltpu.CompilerParams(
            # batch axis parallel -> shards across v7x's 2 TensorCores
            dimension_semantics=("parallel",),
            # explicit VMEM budget (v7x scoped default is 32 MiB of 64 MiB)
            vmem_limit_bytes=32 * 1024 * 1024,
        ),
    )(x, wt, bias, P)

    # Drop the lane-padding back to the true channel count (tiny slice).
    return out[:, :, :Cout]


def _reference_quantized(x_nchw, conv_w, conv_b, adaptive_size):
    """Pure-jnp reference mirroring the kernel's bf16 operand quantization."""
    B, Cin, H, W = x_nchw.shape
    A = adaptive_size
    xq = x_nchw.astype(jnp.bfloat16).astype(jnp.float32)
    wq = conv_w.astype(jnp.bfloat16).astype(jnp.float32)
    x = jnp.transpose(xq, (0, 2, 3, 1)).reshape(B, H * W, Cin)
    y = jnp.maximum(jnp.einsum("bpc,cd->bpd", x, wq) + conv_b, 0.0)
    yq = y.astype(jnp.bfloat16).astype(jnp.float32)
    Pq = _adaptive_pool_matrix(H, W, A).astype(jnp.bfloat16).astype(jnp.float32)
    return jnp.einsum("qp,bpd->bqd", Pq, yq)            # (B, A*A, Cout)


def _reference_f32(x_nchw, conv_w, conv_b, adaptive_size):
    """Pure-f32 reference mirroring the PyTorch forward semantics."""
    B, Cin, H, W = x_nchw.shape
    A = adaptive_size
    x = jnp.transpose(x_nchw, (0, 2, 3, 1)).reshape(B, H * W, Cin)
    y = jnp.maximum(jnp.einsum("bpc,cd->bpd", x, conv_w) + conv_b, 0.0)
    P = _adaptive_pool_matrix(H, W, A)
    return jnp.einsum("qp,bpd->bqd", P, y)              # == att_feats layout


if __name__ == "__main__":
    # opt-like hyperparameters (small synthetic sizes)
    att_feat_size = 32   # Cout of the stand-in backbone
    adaptive_size = 4

    B, Cin, H, W = 2, 4, 16, 16

    key = jax.random.PRNGKey(0)
    kx, kw, kb = jax.random.split(key, 3)
    x = jax.random.normal(kx, (B, Cin, H, W), dtype=jnp.float32)
    conv_w = jax.random.normal(kw, (Cin, att_feat_size), dtype=jnp.float32) * 0.1
    conv_b = jax.random.normal(kb, (att_feat_size,), dtype=jnp.float32) * 0.1

    out = resnet_att_forward(x, conv_w, conv_b, adaptive_size)
    out = jax.block_until_ready(out)

    assert out.shape == (B, adaptive_size * adaptive_size, att_feat_size)

    # Tight check against a reference that applies the same bf16 quantization.
    ref_q = _reference_quantized(x, conv_w, conv_b, adaptive_size)
    np.testing.assert_allclose(np.asarray(out), np.asarray(ref_q),
                               rtol=1e-3, atol=1e-3)

    # Looser check against the true f32 (PyTorch-semantics) reference.
    ref_f32 = _reference_f32(x, conv_w, conv_b, adaptive_size)
    np.testing.assert_allclose(np.asarray(out), np.asarray(ref_f32),
                               rtol=2e-2, atol=2e-2)

    print("KERNEL_OK")
</pallas_src>

<mosaic_0001>
module attributes {stable_mosaic.version = 11 : i64} {
  func.func @_resnet_att_kernel(%arg0: i32, %arg1: memref<1x4x256xbf16, #tpu.memory_space<vmem>>, %arg2: memref<128x4xbf16, #tpu.memory_space<vmem>>, %arg3: memref<128x1xf32, #tpu.memory_space<vmem>>, %arg4: memref<16x256xbf16, #tpu.memory_space<vmem>>, %arg5: memref<1x16x128xf32, #tpu.memory_space<vmem>>) attributes {dimension_semantics = [#tpu.dimension_semantics<parallel>], iteration_bounds = array<i64: 2>, scalar_prefetch = 0 : i64, scratch_operands = 0 : i64, tpu.core_type = #tpu.core_type<tc>, window_params = [{transform_indices = @transform_0, window_bounds = array<i64: 1, 4, 256>}, {pipeline_mode = #tpu.pipeline_mode<synchronous>, transform_indices = @transform_1, window_bounds = array<i64: 128, 4>}, {pipeline_mode = #tpu.pipeline_mode<synchronous>, transform_indices = @transform_2, window_bounds = array<i64: 128, 1>}, {pipeline_mode = #tpu.pipeline_mode<synchronous>, transform_indices = @transform_3, window_bounds = array<i64: 16, 256>}, {transform_indices = @transform_4, window_bounds = array<i64: 1, 16, 128>}]} {
    %c0 = arith.constant 0 : index
    %c0_0 = arith.constant 0 : index
    %0 = vector.load %arg2[%c0, %c0_0] : memref<128x4xbf16, #tpu.memory_space<vmem>>, vector<128x4xbf16>
    %c0_1 = arith.constant 0 : index
    %c0_2 = arith.constant 0 : index
    %c0_3 = arith.constant 0 : index
    %1 = vector.load %arg1[%c0_1, %c0_2, %c0_3] : memref<1x4x256xbf16, #tpu.memory_space<vmem>>, vector<1x4x256xbf16>
    %2 = vector.shape_cast %1 : vector<1x4x256xbf16> to vector<4x256xbf16>
    %cst = arith.constant dense<0.000000e+00> : vector<128x256xf32>
    %3 = tpu.matmul %0, %2, %cst {dimension_numbers = #tpu.dot_dimension_numbers<[1], [0], [0], [1], [0, 0, 1, 1], [], []>} : vector<128x4xbf16>, vector<4x256xbf16>, vector<128x256xf32> -> vector<128x256xf32>
    %c0_4 = arith.constant 0 : index
    %c0_5 = arith.constant 0 : index
    %4 = vector.load %arg3[%c0_4, %c0_5] : memref<128x1xf32, #tpu.memory_space<vmem>>, vector<128x1xf32>
    %5 = vector.broadcast %4 : vector<128x1xf32> to vector<128x256xf32>
    %6 = arith.addf %3, %5 : vector<128x256xf32>
    %cst_6 = arith.constant 0.000000e+00 : f32
    %7 = vector.broadcast %cst_6 : f32 to vector<128x256xf32>
    %8 = arith.maximumf %6, %7 : vector<128x256xf32>
    %9 = arith.truncf %8 : vector<128x256xf32> to vector<128x256xbf16>
    %c0_7 = arith.constant 0 : index
    %c0_8 = arith.constant 0 : index
    %10 = vector.load %arg4[%c0_7, %c0_8] : memref<16x256xbf16, #tpu.memory_space<vmem>>, vector<16x256xbf16>
    %cst_9 = arith.constant dense<0.000000e+00> : vector<16x128xf32>
    %11 = tpu.matmul %10, %9, %cst_9 {dimension_numbers = #tpu.dot_dimension_numbers<[1], [1], [0], [0], [0, 0, 1, 0], [], []>} : vector<16x256xbf16>, vector<128x256xbf16>, vector<16x128xf32> -> vector<16x128xf32>
    %c0_10 = arith.constant 0 : index
    %c0_11 = arith.constant 0 : index
    %c0_12 = arith.constant 0 : index
    %12 = vector.load %arg5[%c0_10, %c0_11, %c0_12] : memref<1x16x128xf32, #tpu.memory_space<vmem>>, vector<1x16x128xf32>
    %13 = vector.shape_cast %12 : vector<1x16x128xf32> to vector<16x128xf32>
    %14 = vector.shape_cast %11 : vector<16x128xf32> to vector<1x16x128xf32>
    tpu.vector_store %arg5[%c0_10, %c0_11, %c0_12], %14 {strides = array<i32>} : memref<1x16x128xf32, #tpu.memory_space<vmem>>, vector<1x16x128xf32>,
    return
  }
  func.func @transform_0(%arg0: i32) -> (i32, i32, i32) {
    %c0_i32 = arith.constant 0 : i32
    %c0_i32_0 = arith.constant 0 : i32
    %c0_i32_1 = arith.constant 0 : i32
    return %arg0, %c0_i32, %c0_i32_0 : i32, i32, i32
  }
  func.func @transform_1(%arg0: i32) -> (i32, i32) {
    %c0_i32 = arith.constant 0 : i32
    %c0_i32_0 = arith.constant 0 : i32
    %c0_i32_1 = arith.constant 0 : i32
    return %c0_i32, %c0_i32_0 : i32, i32
  }
  func.func @transform_2(%arg0: i32) -> (i32, i32) {
    %c0_i32 = arith.constant 0 : i32
    %c0_i32_0 = arith.constant 0 : i32
    %c0_i32_1 = arith.constant 0 : i32
    return %c0_i32, %c0_i32_0 : i32, i32
  }
  func.func @transform_3(%arg0: i32) -> (i32, i32) {
    %c0_i32 = arith.constant 0 : i32
    %c0_i32_0 = arith.constant 0 : i32
    %c0_i32_1 = arith.constant 0 : i32
    return %c0_i32, %c0_i32_0 : i32, i32
  }
  func.func @transform_4(%arg0: i32) -> (i32, i32, i32) {
    %c0_i32 = arith.constant 0 : i32
    %c0_i32_0 = arith.constant 0 : i32
    %c0_i32_1 = arith.constant 0 : i32
    return %arg0, %c0_i32, %c0_i32_0 : i32, i32, i32
  }
}

</mosaic_0001>

<bundles_post_ra>
// kernel: tpu_custom_call.1
= control target key start
LH: loop header
LB: loop body
LE: loop exit
PB: predicated region body
PF: predicated region fallthrough
CT: control target
= control target key end

     0   :  { %9 = vsyncpa [#allocation3], 0  ;;  %s1125_s0 = inlined_call_operand.vmem [shape: bf16[2,4,256], index: 0, kind: input, shape index: {}]   ;;  %s1126_s1 = inlined_call_operand.vmem [shape: bf16[128,4], index: 1, kind: input, shape index: {}]   ;;  %s1127_s2 = inlined_call_operand.vmem [shape: f32[128,1], index: 2, kind: input, shape index: {}]   ;;  %s1128_s3 = inlined_call_operand.vmem [shape: bf16[16,256], index: 3, kind: input, shape index: {}]   ;;  %s1129_s4 = inlined_call_operand.hbm [shape: f32[2,16,128], index: 4, kind: output, shape index: {}]  }
   0x1   :  { %11 = vsyncpa [#allocation3 + $0x1], 0  ;;  %s863_s15 = smov 0   ;;  %s865_s16 = smov 0  }
   0x2   :  { %s867_s17 = smov 0   ;;  %s869_s18 = smov 0  }
   0x3 LB: > { %s884_s19 = sadd.s32 4294967295, %s832_s18   ;;  %s683_s20 = sadd.s32 4294967294, %s832_s18   ;;  %s832_s18 = sphi %s869_s18, %s1135_s18   ;;  %s828_s17 = sphi %s867_s17, %s1134_s17   ;;  %s824_s16 = sphi %s865_s16, %s1133_s16   ;;  %s820_s15 = sphi %s863_s15, %s1132_s15  }
   0x4   : > { %s888_s21 = sadd.s32 1, %s832_s18   ;;  %s113_s22 = sadd.s32 1, %s828_s17 }
   0x5   : > { %s110_s23 = ssub.s32 %s832_s18, %s888_s21  ;;  %p123_p0 = scmp.ne.s32.totalorder %s828_s17, %s824_s16 }
   0x6   : > { %p111_p1 = scmp.eq.s32.totalorder %s110_s23, 0  ;;  %p124_p2 = scmp.eq.s32.totalorder %s884_s19, 1 }
   0x7   : > { %p129_p3 = scmp.ne.s32.totalorder %s824_s16, %s820_s15  ;;  %p130_p4 = scmp.eq.s32.totalorder %s683_s20, 1 }
   0x8   : > { %s899_s24 = scalar_select %p111_p1, %s828_s17, %s113_s22  }
   0x9   : > { %p901_p5 = por %p124_p2, %p123_p0  ;;  %p905_p6 = por %p130_p4, %p129_p3 }
   0xa   : > { %p686_p7 = scmp.ge.s32.totalorder %s832_s18, 1  ;;  %p165_p8 = scmp.lt.s32.totalorder %s832_s18, 3 }
   0xc   : > { %p166_p9 = pnand %p686_p7, %p165_p8 }
   0xd   : > { %p191_p10 = scmp.lt.s32.totalorder (!%p166_p9), %s884_s19, 1  ;;  %s188_s7 = sand.u32 (!%p166_p9), 1, %s824_s16  }
   0xe   : > { %169 = sbr.rel (%p166_p9) target bundleno = 567 (0x237), region = 36  ;;  %s687_s8 = sshll.u32 (!%p166_p9), %s188_s7, 4 }
   0xf   : > { %s190_s9 = scalar_lea.vmem (!%p166_p9), [#allocation2], %s687_s8  ;;  %s716_s11 = sshll.u32 (!%p166_p9), %s884_s19, 8 }
  0x10   : > { %s621_s10 = sshll.u32 (!%p166_p9), %s190_s9, 4  ;;  %s1083_s14 = scalar_lea.hbm (!%p166_p9), %s1129_s4, %s716_s11  ;;  %s1078_s10 = int_to_ptr.vmem [resolvable:$true] %s621_s10 }
  0x11   : > { %s1085_s20 = scalar_lea.sflag (!%p166_p9), [#allocation3], %s188_s7  ;;  %s772_s22 = scalar_lea.vmem (!%p166_p9), %s1078_s10, 256 }
  0x12   : > { %p773_p11 = scmp.ne.s32.totalorder (!%p166_p9), %s1078_s10, %s772_s22 }
  0x13   : > { %v834_v0 = vmov 0   ;;  %s192_s27 = scalar_select %p191_p10, %s884_s19, 1  ;;  %vm384_vm0 = vcmask 1041408   ;;  %v228_v2 = vld [vmem:[%s1127_s2 + $0x70] sm:$0xff]  ;;  %v226_v5 = vld [vmem:[%s1127_s2 + $0x60] sm:$0xff]  ;;  %v229_v6 = vld [vmem:[%s1127_s2 + $0x78] sm:$0xff] }
  0x14   : > { %423 = vmatprep.mubr.bf16.mxu0 %v834_v0  ;;  %759 = vset.pattern.permute.xlu0 %v834_v0  ;;  %v761_v7 = vld [vmem:[%s1126_s1] sm:$0xff]   ;;  %v227_v8 = vld [vmem:[%s1127_s2 + $0x68] sm:$0xff]  ;;  %vm359_vm1 = vcmask 31744   ;;  %v224_v9 = vld [vmem:[%s1127_s2 + $0x50] sm:$0xff]  ;;  %p774_p12 = pnand %p773_p11, %p901_p5  ;;  %s835_s19 = smov [#allocation2]  }
  0x15   : > { %760 = vset.pattern.permute.xlu1 %v834_v0  ;;  %s715_s28 = sshll.u32 %s192_s27, 2  ;;  %302 = vperm.xlu0 %759, %v228_v2   ;;  %v225_v10 = vld [vmem:[%s1127_s2 + $0x58] sm:$0xff]  ;;  %v222_v11 = vld [vmem:[%s1127_s2 + $0x40] sm:$0xff]  ;;  %v762_v12 = vld [vmem:[%s1126_s1 + $0x8] sm:$0xff]   ;;  %s776_s23 = sshll.u32 %s835_s19, 4  ;;  %s777_s23 = int_to_ptr.vmem [resolvable:$false] %s776_s23 }
  0x16   : > { %s195_s5 = scalar_lea.vmem %s1125_s0, %s715_s28  ;;  %292 = vperm.xlu1 %760, %v226_v5   ;;  %v223_v13 = vld [vmem:[%s1127_s2 + $0x48] sm:$0xff]  ;;  %v220_v14 = vld [vmem:[%s1127_s2 + $0x30] sm:$0xff]  ;;  %v221_v15 = vld [vmem:[%s1127_s2 + $0x38] sm:$0xff]  ;;  %p775_p13 = pneg %p774_p12 }
  0x17   : > { %v698_v1 = vld.sshfl [vmem:[%s195_s5] sm:$0x33 pattern:$0x76325410]  ;;  %v763_v17 = vld [vmem:[%s1126_s1 + $0x10] sm:$0xff]   ;;  %v219_v18 = vld [vmem:[%s1127_s2 + $0x28] sm:$0xff]  ;;  %p779_p0 = scmp.lt.s32.totalorder %s1078_s10, %s777_s23 }
  0x18   : > { %v358_v3 = vcombine.high %v698_v1, %v698_v1  ;;  %v386_v4 = vsel %vm384_vm0, %v698_v1, 0  ;;  %v218_v16 = vld [vmem:[%s1127_s2 + $0x20] sm:$0xff]  ;;  %v216_v19 = vld [vmem:[%s1127_s2 + $0x10] sm:$0xff]  ;;  %v217_v20 = vld [vmem:[%s1127_s2 + $0x18] sm:$0xff]  ;;  %s778_s27 = scalar_lea.vmem %s777_s23, 512 }
  0x19   : > { %307 = vperm.xlu0 %759, %v229_v6   ;;  %v214_v21 = vld [vmem:[%s1127_s2] sm:$0xff]  ;;  %v764_v22 = vld [vmem:[%s1126_s1 + $0x18] sm:$0xff]   ;;  %v215_v23 = vld [vmem:[%s1127_s2 + $0x8] sm:$0xff]  ;;  %p780_p1 = scmp.lt.s32.totalorder %s778_s27, %s772_s22 }
  0x1a   : > { %699 = vmatprep.subr.msk.bf16.mxu0 %vm384_vm0, %v358_v3  ;;  %297 = vperm.xlu1 %760, %v227_v8   ;;  %v765_v24 = vld [vmem:[%s1126_s1 + $0x20] sm:$0xff]   ;;  %v766_v25 = vld [vmem:[%s1126_s1 + $0x28] sm:$0xff]   ;;  %v767_v26 = vld [vmem:[%s1126_s1 + $0x30] sm:$0xff]  }
  0x1b   : > { %406 = vmatpush1.bf16.msra.mxu0 %v386_v4  ;;  %v768_v27 = vld [vmem:[%s1126_s1 + $0x38] sm:$0xff]   ;;  %v771_v42 = vld [vmem:[%s1128_s3 + $0x4] ss:$8 sps:$4 sm:$0xff]   ;;  %p781_p2 = por %p780_p1, %p779_p0 }
  0x1c   : > { %596 = vmatprep.mubr.bf16.mxu1 %v771_v42 }
  0x1d   : > { %282 = vperm.xlu0 %759, %v224_v9   ;;  %p782_p3 = pnand %p781_p2, %p775_p13 }
  0x1e   : > { %700 = vmatmul.mubr.msk.bf16.vlgmr.msra.gmra.mxu0 %vm359_vm1, %v761_v7  ;;  %287 = vperm.xlu1 %760, %v225_v10  }
  0x1f   : > { %433 = vmatprep.mubr.bf16.mxu0 %v834_v0 }
  0x21   : > { %272 = vperm.xlu0 %759, %v222_v11  }
  0x22   : > { %277 = vperm.xlu1 %760, %v223_v13  }
  0x25   : > { %262 = vperm.xlu0 %759, %v220_v14  }
  0x26   : > { %701 = vmatmul.mubr.msk.bf16.gmra.mxu0 %vm359_vm1, %v762_v12  ;;  %267 = vperm.xlu1 %760, %v221_v15  }
  0x27   : > { %443 = vmatprep.mubr.bf16.mxu0 %v834_v0 }
  0x29   : > { %252 = vperm.xlu0 %759, %v218_v16  }
  0x2a   : > { %257 = vperm.xlu1 %760, %v219_v18  }
  0x2d   : > { %242 = vperm.xlu0 %759, %v216_v19  }
  0x2e   : > { %702 = vmatmul.mubr.msk.bf16.gmra.mxu0 %vm359_vm1, %v763_v17  ;;  %247 = vperm.xlu1 %760, %v217_v20  }
  0x2f   : > { %453 = vmatprep.mubr.bf16.mxu0 %v834_v0 }
  0x31   : > { %232 = vperm.xlu0 %759, %v214_v21  }
  0x32   : > { %237 = vperm.xlu1 %760, %v215_v23  }
  0x36   : > { %703 = vmatmul.mubr.msk.bf16.gmra.mxu0 %vm359_vm1, %v764_v22 }
  0x37   : > { %463 = vmatprep.mubr.bf16.mxu0 %v834_v0 }
  0x3e   : > { %704 = vmatmul.mubr.msk.bf16.gmra.mxu0 %vm359_vm1, %v765_v24 }
  0x3f   : > { %473 = vmatprep.mubr.bf16.mxu0 %v834_v0 }
  0x46   : > { %705 = vmatmul.mubr.msk.bf16.gmra.mxu0 %vm359_vm1, %v766_v25 }
  0x47   : > { %483 = vmatprep.mubr.bf16.mxu0 %v834_v0 }
  0x4e   : > { %706 = vmatmul.mubr.msk.bf16.gmra.mxu0 %vm359_vm1, %v767_v26 }
  0x4f   : > { %493 = vmatprep.mubr.bf16.mxu0 %v834_v0 }
  0x56   : > { %707 = vmatmul.mubr.msk.bf16.gmra.mxu0 %vm359_vm1, %v768_v27 }
  0x90   : > { %v1006_v28 = vpop.permute.xlu0 %302 }
  0x91   : > { %v1008_v29 = vpop.permute.xlu1 %292 }
  0x94   : > { %v1010_v30 = vpop.permute.xlu0 %307 }
  0x95   : > { %v1012_v31 = vpop.permute.xlu1 %297 }
  0x98   : > { %v1014_v32 = vpop.permute.xlu0 %282 }
  0x99   : > { %v1016_v33 = vpop.permute.xlu1 %287 }
  0x9c   : > { %v1018_v34 = vpop.permute.xlu0 %272 }
  0x9d   : > { %v1020_v35 = vpop.permute.xlu1 %277 }
  0xa0   : > { %v1022_v36 = vpop.permute.xlu0 %262 }
  0xa1   : > { %v1024_v37 = vpop.permute.xlu1 %267 }
  0xa4   : > { %v253_v38 = vpop.permute.xlu0 %252 }
  0xa5   : > { %v258_v39 = vpop.permute.xlu1 %257 }
  0xa8   : > { %v243_v40 = vpop.permute.xlu0 %242 }
  0xa9   : > { %v248_v41 = vpop.permute.xlu1 %247 }
  0xac   : > { %v233_v43 = vpop.permute.xlu0 %232 }
  0xad   : > { %v238_v46 = vpop.permute.xlu1 %237 }
  0xde   : > { %v425_v44 = vpop.f32.mrf.mxu0 }
  0xdf   : > { %v426_v47 = vadd.f32 %v425_v44, %v233_v43 }
  0xe0   : > { %v427_v45 = vpop.f32.mrf.mxu0 }
  0xe1   : > { %v428_v49 = vadd.f32 %v427_v45, %v233_v43  ;;  %v504_v52 = vmax.f32 %v426_v47, 0.0 }
  0xe2   : > { %v429_v48 = vpop.f32.mrf.mxu0 }
  0xe3   : > { %v430_v50 = vadd.f32 %v429_v48, %v238_v46  ;;  %v505_v56 = vmax.f32 %v428_v49, 0.0 }
  0xe4   : > { %v431_v51 = vpop.f32.mrf.mxu0 }
  0xe5   : > { %v506_v53 = vmax.f32 %v430_v50, 0.0  ;;  %v432_v54 = vadd.f32 %v431_v51, %v238_v46 }
  0xe6   : > { %v435_v55 = vpop.f32.mrf.mxu0 }
  0xe7   : > { %v1029_v57 = vpack.c.bf16 %v506_v53, %v504_v52  ;;  %v507_v58 = vmax.f32 %v432_v54, 0.0  ;;  %v436_v61 = vadd.f32 %v435_v55, %v243_v40 }
  0xe8   : > { %v437_v59 = vpop.f32.mrf.mxu0 }
  0xe9   : > { %v1031_v60 = vpack.c.bf16 %v507_v58, %v505_v56  ;;  %v438_v63 = vadd.f32 %v437_v59, %v243_v40  ;;  %v508_v2 = vmax.f32 %v436_v61, 0.0 }
  0xea   : > { %v439_v62 = vpop.f32.mrf.mxu0 }
  0xeb   : > { %v440_v0 = vadd.f32 %v439_v62, %v248_v41  ;;  %v509_v6 = vmax.f32 %v438_v63, 0.0 }
  0xec   : > { %v441_v1 = vpop.f32.mrf.mxu0 }
  0xed   : > { %v510_v3 = vmax.f32 %v440_v0, 0.0  ;;  %v442_v4 = vadd.f32 %v441_v1, %v248_v41 }
  0xee   : > { %v445_v5 = vpop.f32.mrf.mxu0 }
  0xef   : > { %v1033_v7 = vpack.c.bf16 %v510_v3, %v508_v2  ;;  %v511_v8 = vmax.f32 %v442_v4, 0.0  ;;  %v446_v11 = vadd.f32 %v445_v5, %v253_v38 }
  0xf0   : > { %v447_v9 = vpop.f32.mrf.mxu0 }
  0xf1   : > { %v1035_v10 = vpack.c.bf16 %v511_v8, %v509_v6  ;;  %v448_v13 = vadd.f32 %v447_v9, %v253_v38  ;;  %v512_v16 = vmax.f32 %v446_v11, 0.0 }
  0xf2   : > { %v449_v12 = vpop.f32.mrf.mxu0 }
  0xf3   : > { %v450_v14 = vadd.f32 %v449_v12, %v258_v39  ;;  %v513_v20 = vmax.f32 %v448_v13, 0.0 }
  0xf4   : > { %v451_v15 = vpop.f32.mrf.mxu0 }
  0xf5   : > { %v514_v17 = vmax.f32 %v450_v14, 0.0  ;;  %v452_v18 = vadd.f32 %v451_v15, %v258_v39 }
  0xf6   : > { %v455_v19 = vpop.f32.mrf.mxu0 }
  0xf7   : > { %v1037_v21 = vpack.c.bf16 %v514_v17, %v512_v16  ;;  %v515_v22 = vmax.f32 %v452_v18, 0.0  ;;  %v456_v25 = vadd.f32 %v455_v19, %v1022_v36 }
  0xf8   : > { %v1039_v23 = vpop.f32.mrf.mxu0 }
  0xf9   : > { %v1041_v24 = vpack.c.bf16 %v515_v22, %v513_v20  ;;  %v516_v40 = vmax.f32 %v456_v25, 0.0 }
  0xfa   : > { %v459_v26 = vpop.f32.mrf.mxu0 }
  0xfb   : > { %v460_v27 = vadd.f32 %v459_v26, %v1024_v37 }
  0xfc   : > { %v461_v38 = vpop.f32.mrf.mxu0 }
  0xfd   : > { %v518_v41 = vmax.f32 %v460_v27, 0.0 }
  0xfe   : > { %v465_v42 = vpop.f32.mrf.mxu0 }
  0xff   : > { %v1045_v43 = vpack.c.bf16 %v518_v41, %v516_v40 }
 0x100   : > { %v467_v39 = vpop.f32.mrf.mxu0 }
 0x101   : > { %v468_v26 = vadd.f32 %v467_v39, %v1018_v34 }
 0x102   : > { %v469_v44 = vpop.f32.mrf.mxu0 }
 0x103   : > { %v521_v41 = vmax.f32 %v468_v26, 0.0 }
 0x104   : > { %v471_v45 = vpop.f32.mrf.mxu0 }
 0x106   : > { %v475_v46 = vpop.f32.mrf.mxu0 }
 0x107   : > { %v476_v25 = vadd.f32 %v475_v46, %v1014_v32 }
 0x108   : > { %v477_v47 = vpop.f32.mrf.mxu0 }
 0x109   : > { %v478_v15 = vadd.f32 %v477_v47, %v1014_v32  ;;  %v524_v40 = vmax.f32 %v476_v25, 0.0  ;;  %v470_v47 = vadd.f32 %v469_v44, %v1020_v35  ;;  %v458_v32 = vadd.f32 %v1039_v23, %v1022_v36 }
 0x10a   : > { %v479_v48 = vpop.f32.mrf.mxu0 }
 0x10b   : > { %v525_v18 = vmax.f32 %v478_v15, 0.0  ;;  %v480_v19 = vadd.f32 %v479_v48, %v1016_v33  ;;  %v466_v48 = vadd.f32 %v465_v42, %v1018_v34  ;;  %v769_v34 = vld [vmem:[%s1128_s3] ss:$8 sps:$4 sm:$0xff]  }
 0x10c   : > { %v481_v49 = vpop.f32.mrf.mxu0 }
 0x10d   : > { %v482_v13 = vadd.f32 %v481_v49, %v1016_v33  ;;  %v520_v46 = vmax.f32 %v466_v48, 0.0 }
 0x10e   : > { %v485_v50 = vpop.f32.mrf.mxu0 }
 0x10f   : > { %v527_v16 = vmax.f32 %v482_v13, 0.0 }
 0x110   : > { %v487_v51 = vpop.f32.mrf.mxu0 }
 0x111   : > { %v488_v0 = vadd.f32 %v487_v51, %v1008_v29  ;;  %v547_v22 = vpack.c.bf16 %v527_v16, %v525_v18  ;;  %v517_v51 = vmax.f32 %v458_v32, 0.0 }
 0x112   : > { %v489_v52 = vpop.f32.mrf.mxu0 }
 0x113   : > { %v529_v8 = vmax.f32 %v488_v0, 0.0  ;;  %v490_v11 = vadd.f32 %v489_v52, %v1012_v31 }
 0x114   : > { %v491_v53 = vpop.f32.mrf.mxu0 }
 0x115   : > { %v492_v58 = vadd.f32 %v491_v53, %v1012_v31  ;;  %v472_v31 = vadd.f32 %v471_v45, %v1020_v35  ;;  %v522_v45 = vmax.f32 %v470_v47, 0.0 }
 0x116   : > { %v495_v54 = vpop.f32.mrf.mxu0 }
 0x117   : > { %v496_v62 = vadd.f32 %v495_v54, %v1006_v28  ;;  %v531_v3 = vmax.f32 %v492_v58, 0.0  ;;  %v523_v27 = vmax.f32 %v472_v31, 0.0  ;;  %v544_v52 = vpack.c.bf16 %v522_v45, %v520_v46 }
 0x118   : > { %v497_v55 = vpop.f32.mrf.mxu0 }
 0x119   : > { %v498_v59 = vadd.f32 %v497_v55, %v1006_v28  ;;  %v532_v6 = vmax.f32 %v496_v62, 0.0  ;;  %v549_v14 = vpack.c.bf16 %v531_v3, %v529_v8  ;;  %v486_v28 = vadd.f32 %v485_v50, %v1008_v29 }
 0x11a   : > { %v499_v56 = vpop.f32.mrf.mxu0  ;;  %v526_v29 = vmax.f32 %v480_v19, 0.0  ;;  %v462_v50 = vadd.f32 %v461_v38, %v1024_v37  ;;  %v545_v33 = vpack.c.bf16 %v523_v27, %v521_v41 }
 0x11b   : > { %v500_v61 = vadd.f32 %v499_v56, %v1010_v30  ;;  %v533_v4 = vmax.f32 %v498_v59, 0.0  ;;  %v528_v17 = vmax.f32 %v486_v28, 0.0 }
 0x11c   : > { %v501_v63 = vpop.f32.mrf.mxu0  ;;  %v546_v49 = vpack.c.bf16 %v526_v29, %v524_v40  ;;  %v519_v39 = vmax.f32 %v462_v50, 0.0 }
 0x11d   : > { %v502_v1 = vadd.f32 %v501_v63, %v1010_v30  ;;  %v534_v2 = vmax.f32 %v500_v61, 0.0  ;;  %v530_v30 = vmax.f32 %v490_v11, 0.0 }
 0x11e   : > { %v543_v53 = vpack.c.bf16 %v519_v39, %v517_v51 }
 0x11f   : > { %v535_v5 = vmax.f32 %v502_v1, 0.0  ;;  %v550_v12 = vpack.c.bf16 %v534_v2, %v532_v6  ;;  %v548_v20 = vpack.c.bf16 %v530_v30, %v528_v17 }
 0x121   : > { %v551_v9 = vpack.c.bf16 %v535_v5, %v533_v4 }
 0x123   : > { %564 = vmatprep.subr.bf16.mxu1 %v551_v9 }
 0x124   : > { %565 = vmatpush1.bf16.xpose.msra.mxu1 %v550_v12 }
 0x125   : > { %566 = vmatprep.subr.bf16.mxu1 %v549_v14 }
 0x12c   : > { %567 = vmatpush1.bf16.xpose.msra.mxu1 %v548_v20 }
 0x12d   : > { %568 = vmatprep.subr.bf16.mxu1 %v547_v22 }
 0x134   : > { %569 = vmatpush1.bf16.xpose.msra.mxu1 %v546_v49 }
 0x135   : > { %570 = vmatprep.subr.bf16.mxu1 %v545_v33 }
 0x13c   : > { %571 = vmatpush1.bf16.xpose.msra.mxu1 %v544_v52 }
 0x13d   : > { %572 = vmatprep.subr.bf16.mxu1 %v543_v53 }
 0x144   : > { %573 = vmatpush1.bf16.xpose.msra.mxu1 %v1045_v43 }
 0x145   : > { %574 = vmatprep.subr.bf16.mxu1 %v1041_v24 }
 0x14c   : > { %575 = vmatpush1.bf16.xpose.msra.mxu1 %v1037_v21 }
 0x14d   : > { %576 = vmatprep.subr.bf16.mxu1 %v1035_v10 }
 0x154   : > { %577 = vmatpush1.bf16.xpose.msra.mxu1 %v1033_v7 }
 0x155   : > { %578 = vmatprep.subr.bf16.mxu1 %v1031_v60 }
 0x15c   : > { %579 = vmatpush1.bf16.xpose.msra.mxu1 %v1029_v57 }
 0x163   : > { %597 = vmatmul.mubr.bf16.vlgmr.msra.gmra.mxu1 %v769_v34 }
 0x223   : > { %v598_v35 = vpop.f32.mrf.mxu1 }
 0x224   : > { %605 = vst [vmem:[%s190_s9] sm:$0xff] %v598_v35 }
 0x225   : > { %v600_v36 = vpop.f32.mrf.mxu1 }
 0x227   : > { %v601_v37 = vpop.f32.mrf.mxu1 }
 0x228   : > { %606 = vst [vmem:[%s190_s9 + $0x8] sm:$0xff] %v601_v37 }
 0x229   : > { %v603_v57 = vpop.f32.mrf.mxu1 }
 0x22a   : > { %785 = shalt.err (!%p782_p3)
}
 0x22b   : > { %s786_s28 = scalar_lea.hbm %s1083_s14, 256  ;;  %s790_s5 = scalar_lea.hbm %s1129_s4, 512 }
 0x22c   : > { %p787_p4 = scmp.ne.s32.totalorder %s1083_s14, %s786_s28  ;;  %p791_p9 = scmp.lt.s32.totalorder %s1083_s14, %s1129_s4 }
 0x22d   : > { %p792_p10 = scmp.lt.s32.totalorder %s790_s5, %s786_s28 }
 0x22e   : > { %p788_p7 = pnand %p787_p4, %p901_p5 }
 0x22f   : > { %p793_p11 = por %p792_p10, %p791_p9 }
 0x230   : > { %p789_p8 = pneg %p788_p7 }
 0x232   : > { %p794_p12 = pnand %p793_p11, %p789_p8 }
 0x234   : > { %797 = shalt.err (!%p794_p12)
}
 0x235   : > { %s836_s8 = smov 128   ;;  %s837_s9 = smov 8  }
 0x236   : > { %717 = dma.vmem_to_hbm [thread:$0]  (%p901_p5), %s1078_s10, 256, %s1083_s14, %s1085_s20, %s836_s8, %s836_s8, %s837_s9  }
 0x237 PF: > { %p723_p13 = scmp.ge.s32.totalorder %s832_s18, 2  ;;  %s636_s11 = sand.u32 1, %s820_s15  }
 0x238   : > { %s637_s12 = scalar_lea.sflag [#allocation3], %s636_s11 }
 0x239   : > { %p720_p0 = pnand %p723_p13, %p905_p6 }
 0x23b   : > { %p721_p1 = pneg %p720_p0 }
 0x23d   : > { %815 = dma.done.wait (%p721_p1), %s637_s12, 256  }
 0x23e   : > { %817 = vsyncadd (%p721_p1), %s637_s12, 4294967040  ;;  %p14_p2 = scmp.ge.s32.totalorder %s888_s21, 4   ;;  %s1132_s15 = smov %s824_s16 }
 0x23f   : > { %s1133_s16 = smov %s828_s17  ;;  %s1134_s17 = smov %s899_s24 }
 0x240   : > { %s1135_s18 = smov %s888_s21  ;;  %16 = sbr.rel (!%p14_p2) target bundleno = 3 (0x3), region = 71 }
 0x245   :  { %642 = vsyncpa [#allocation3], 1 }
 0x246   :  { %644 = vsyncpa [#allocation3 + $0x1], 1 }

</bundles_post_ra>
